<compile_context>
chip_gen: v7x
topology: tpu7x:2x2x1
jax: 0.10.0
libtpu: 0.0.40
codegen_flags: <defaults>
</compile_context>

<pallas_src>
import functools

import jax
import jax.numpy as jnp
from jax.experimental import pallas as pl
from jax.experimental.pallas import tpu as pltpu


def _round_up(x: int, m: int) -> int:
    return ((x + m - 1) // m) * m


def _dwsep_s1_kernel(x_ref, w_ref, b_ref, o_ref, xpad_ref, *,
                     kernel_size: int, padding: int, l_in: int, slab_w: int):
    """stride == 1 path. One (batch, L-tile) per grid step.

    x_ref   : (1, C, L)      unpadded input, VMEM-resident across all L-tiles
    w_ref   : (O, K*C)       fused weight  W2[o, k*C + c] = w_pw[o,c] * w_dw[c,k]
    b_ref   : (O, 1)  f32    fused bias    b_pw + w_pw @ b_dw
    o_ref   : (1, O, TL)     output tile (TL % 128 == 0, lane-dense stores)
    xpad_ref: (C, Lpad)      VMEM scratch with the zero-padded input row
    """
    j = pl.program_id(1)
    c = x_ref.shape[1]
    tl = o_ref.shape[2]
    l_pad = xpad_ref.shape[1]

    # Once per batch element.  The grid iterates j innermost (row-major), so
    # j == 0 runs first for each b; the j axis must stay "arbitrary" because
    # this scratch fill is carried across the L-tiles of the same b.
    @pl.when(j == 0)
    def _():
        # Zero ONLY the halos (left pad + right tail); the interior is
        # immediately overwritten by the x copy -> no full-slab zero pass.
        if padding > 0:
            xpad_ref[:, :padding] = jnp.zeros((c, padding), xpad_ref.dtype)
        tail = l_pad - padding - l_in
        if tail > 0:
            xpad_ref[:, padding + l_in:] = jnp.zeros((c, tail), xpad_ref.dtype)
        xpad_ref[:, padding:padding + l_in] = x_ref[0]

    # One aligned slab read covering all K taps of this tile, then derive the
    # taps in-register (static slices) and stack them along sublanes so the
    # whole tile is a single MXU contraction of depth K*C.
    base = pl.multiple_of(j * tl, 128)
    slab = xpad_ref[:, pl.ds(base, slab_w)]                      # (C, slab_w)
    xcol = jnp.concatenate(
        [slab[:, k:k + tl] for k in range(kernel_size)], axis=0)  # (K*C, TL)

    acc = jnp.dot(w_ref[...], xcol, preferred_element_type=jnp.float32)
    acc = acc + b_ref[...]                                       # (O, TL) f32
    o_ref[0] = acc.astype(o_ref.dtype)


def _pw_matmul_kernel(xcol_ref, w_ref, b_ref, o_ref):
    """stride > 1 path: activations were de-strided (im2col) once in the
    wrapper, so each tile is a plain matmul over a contiguous (K*C, TL) block."""
    acc = jnp.dot(w_ref[...], xcol_ref[0], preferred_element_type=jnp.float32)
    acc = acc + b_ref[...]
    o_ref[0] = acc.astype(o_ref.dtype)


def dwsep_conv1d(x, w_dw, b_dw, w_pw, b_pw, *, stride: int = 1, padding: int = 0,
                 tile_l: int = 2048):
    """x: (B, C, L); w_dw: (C, K); b_dw: (C,); w_pw: (O, C); b_pw: (O,)."""
    B, C, L = x.shape
    K = w_dw.shape[-1]
    O = w_pw.shape[0]
    L_out = (L + 2 * padding - K) // stride + 1
    assert L_out >= 1, "invalid conv config"

    # Lane-dense output tile: multiple of 128, capped at 2048 by default
    # (bigger tiles amortize the per-grid-step overhead; the output block is
    # only O*TL*itemsize so VMEM cost is negligible).
    tile_l = max(128, (tile_l // 128) * 128)
    tl = min(tile_l, 128 * pl.cdiv(L_out, 128))
    n_tiles = pl.cdiv(L_out, tl)

    # Exact linear fold of depthwise into pointwise, laid out for ONE
    # contraction of depth K*C (row order k*C + c matches xcol below).
    w_koc = (w_pw[None, :, :].astype(jnp.float32) *
             w_dw.T[:, None, :].astype(jnp.float32))               # (K, O, C)
    w2 = jnp.transpose(w_koc, (1, 0, 2)).reshape(O, K * C).astype(x.dtype)
    b_eff = (b_pw.astype(jnp.float32) +
             w_pw.astype(jnp.float32) @ b_dw.astype(jnp.float32))[:, None]  # (O,1)

    isz = jnp.dtype(x.dtype).itemsize

    def _tile_bytes(rows, cols, nbytes):
        return _round_up(rows, 8) * _round_up(cols, 128) * nbytes

    cost = pl.CostEstimate(
        flops=2 * B * O * K * C * L_out,
        transcendentals=0,
        bytes_accessed=(B * C * L + O * K * C + B * O * L_out) * isz + O * 4)

    if stride == 1:
        slab_w = _round_up(tl + K - 1, 128)
        need = (n_tiles - 1) * tl + slab_w
        # max(..., padding + L) fixes the latent scratch under-sizing; lane
        # rounding keeps tap reads inside a clean (8,128)-tiled slab.
        l_pad = _round_up(max(need, padding + L), 128)

        vmem_est = (2 * _tile_bytes(C, L, isz)          # resident x block (dbl-buf)
                    + 2 * _tile_bytes(O, tl, isz)       # output block
                    + 2 * _tile_bytes(O, K * C, isz)    # fused weight
                    + 2 * _tile_bytes(O, 1, 4)          # fused bias
                    + _tile_bytes(C, l_pad, isz))       # padded scratch
        vmem_limit = min(max(int(vmem_est * 1.5) + (4 << 20), 32 << 20), 110 << 20)

        kernel = functools.partial(_dwsep_s1_kernel, kernel_size=K,
                                   padding=padding, l_in=L, slab_w=slab_w)
        return pl.pallas_call(
            kernel,
            out_shape=jax.ShapeDtypeStruct((B, O, L_out), x.dtype),
            grid=(B, n_tiles),
            in_specs=[
                # Full-length input block; index_map ignores j so it stays
                # resident in VMEM across all L-tiles of one batch element.
                pl.BlockSpec((1, C, L), lambda b, j: (b, 0, 0)),
                pl.BlockSpec((O, K * C), lambda b, j: (0, 0)),
                pl.BlockSpec((O, 1), lambda b, j: (0, 0)),
            ],
            out_specs=pl.BlockSpec((1, O, tl), lambda b, j: (b, 0, j)),
            scratch_shapes=[pltpu.VMEM((C, l_pad), x.dtype)],
            compiler_params=pltpu.CompilerParams(
                # j must stay "arbitrary": the scratch fill at j == 0 is carried
                # across the L-tiles of the same batch element.
                dimension_semantics=("parallel", "arbitrary"),
                vmem_limit_bytes=vmem_limit),
            cost_estimate=cost,
        )(x, w2, b_eff)

    # ---------------- stride > 1: de-stride ONCE (wrapper-side im2col) -------
    x_pad = jnp.pad(x, ((0, 0), (0, 0), (padding, padding)))
    span = (L_out - 1) * stride + 1
    cols = [x_pad[:, :, k:k + span:stride] for k in range(K)]     # each (B, C, L_out)
    x_col = jnp.concatenate(cols, axis=1)                          # (B, K*C, L_out)
    if n_tiles * tl != L_out:
        x_col = jnp.pad(x_col, ((0, 0), (0, 0), (0, n_tiles * tl - L_out)))

    vmem_est = (2 * _tile_bytes(K * C, tl, isz)
                + 2 * _tile_bytes(O, tl, isz)
                + 2 * _tile_bytes(O, K * C, isz)
                + 2 * _tile_bytes(O, 1, 4))
    vmem_limit = min(max(int(vmem_est * 1.5) + (4 << 20), 32 << 20), 110 << 20)

    return pl.pallas_call(
        _pw_matmul_kernel,
        out_shape=jax.ShapeDtypeStruct((B, O, L_out), x.dtype),
        grid=(B, n_tiles),
        in_specs=[
            pl.BlockSpec((1, K * C, tl), lambda b, j: (b, 0, j)),
            pl.BlockSpec((O, K * C), lambda b, j: (0, 0)),
            pl.BlockSpec((O, 1), lambda b, j: (0, 0)),
        ],
        out_specs=pl.BlockSpec((1, O, tl), lambda b, j: (b, 0, j)),
        compiler_params=pltpu.CompilerParams(
            dimension_semantics=("parallel", "parallel"),
            vmem_limit_bytes=vmem_limit),
        cost_estimate=cost,
    )(x_col, w2, b_eff)


def _reference(x, w_dw, b_dw, w_pw, b_pw, *, stride: int, padding: int):
    """Pure-JAX reference mirroring PyTorch Conv1d semantics (unfused)."""
    K = w_dw.shape[1]
    x_pad = jnp.pad(x, ((0, 0), (0, 0), (padding, padding)))
    L_out = (x.shape[-1] + 2 * padding - K) // stride + 1
    taps = [x_pad[:, :, k:k + (L_out - 1) * stride + 1:stride] * w_dw[None, :, k:k + 1]
            for k in range(K)]
    dw = sum(taps) + b_dw[None, :, None]                          # (B, C, L_out)
    return jnp.einsum('oc,bcl->bol', w_pw, dw) + b_pw[None, :, None]


if __name__ == "__main__":
    # Module config: input_dim=4, output_dim=8, kernel_size=3
    B, C, O, L, K = 2, 4, 8, 16, 3

    key = jax.random.PRNGKey(0)
    kx, k1, k2, k3, k4 = jax.random.split(key, 5)

    x = jax.random.normal(kx, (B, C, L), dtype=jnp.float32)

    # Deterministic PyTorch-like uniform init bounds (values synthetic).
    bound_dw = 1.0 / (1 * K) ** 0.5       # depthwise fan_in = 1*K (groups=C)
    bound_pw = 1.0 / (C * 1) ** 0.5       # pointwise fan_in = C*1
    w_dw = jax.random.uniform(k1, (C, K), jnp.float32, -bound_dw, bound_dw)
    b_dw = jax.random.uniform(k2, (C,), jnp.float32, -bound_dw, bound_dw)
    w_pw = jax.random.uniform(k3, (O, C), jnp.float32, -bound_pw, bound_pw)
    b_pw = jax.random.uniform(k4, (O,), jnp.float32, -bound_pw, bound_pw)

    for stride, padding in [(1, 1), (2, 1)]:
        out = dwsep_conv1d(x, w_dw, b_dw, w_pw, b_pw, stride=stride, padding=padding)
        out = jax.block_until_ready(out)
        ref = _reference(x, w_dw, b_dw, w_pw, b_pw, stride=stride, padding=padding)
        L_out = (L + 2 * padding - K) // stride + 1
        assert out.shape == (B, O, L_out)
        assert jnp.allclose(out, ref, atol=1e-4, rtol=1e-4), \
            f"mismatch vs reference (stride={stride}, padding={padding})"

    print("KERNEL_OK")
</pallas_src>

<mosaic_0001>
module attributes {stable_mosaic.version = 11 : i64} {
  func.func @_dwsep_s1_kernel(%arg0: i32, %arg1: i32, %arg2: memref<1x4x16xf32, #tpu.memory_space<vmem>>, %arg3: memref<8x12xf32, #tpu.memory_space<vmem>>, %arg4: memref<8x1xf32, #tpu.memory_space<vmem>>, %arg5: memref<1x8x128xf32, #tpu.memory_space<vmem>>, %arg6: memref<4x256xf32, #tpu.memory_space<vmem>>) attributes {dimension_semantics = [#tpu.dimension_semantics<parallel>, #tpu.dimension_semantics<arbitrary>], iteration_bounds = array<i64: 2, 1>, scalar_prefetch = 0 : i64, scratch_operands = 1 : i64, tpu.core_type = #tpu.core_type<tc>, window_params = [{transform_indices = @transform_0, window_bounds = array<i64: 1, 4, 16>}, {pipeline_mode = #tpu.pipeline_mode<synchronous>, transform_indices = @transform_1, window_bounds = array<i64: 8, 12>}, {pipeline_mode = #tpu.pipeline_mode<synchronous>, transform_indices = @transform_2, window_bounds = array<i64: 8, 1>}, {transform_indices = @transform_3, window_bounds = array<i64: 1, 8, 128>}]} {
    %c0_i32 = arith.constant 0 : i32
    %0 = arith.cmpi eq, %arg1, %c0_i32 : i32
    %1 = arith.extui %0 : i1 to i32
    %c0_i32_0 = arith.constant 0 : i32
    %2 = arith.cmpi ne, %1, %c0_i32_0 : i32
    scf.if %2 {
      %cst_8 = arith.constant 0.000000e+00 : f32
      %19 = vector.broadcast %cst_8 : f32 to vector<4x1xf32>
      %c0_9 = arith.constant 0 : index
      %c0_10 = arith.constant 0 : index
      %20 = vector.load %arg6[%c0_9, %c0_10] : memref<4x256xf32, #tpu.memory_space<vmem>>, vector<4x1xf32>
      tpu.vector_store %arg6[%c0_9, %c0_10], %19 {strides = array<i32>} : memref<4x256xf32, #tpu.memory_space<vmem>>, vector<4x1xf32>,
      %cst_11 = arith.constant 0.000000e+00 : f32
      %21 = vector.broadcast %cst_11 : f32 to vector<4x239xf32>
      %c0_12 = arith.constant 0 : index
      %c17 = arith.constant 17 : index
      %22 = vector.load %arg6[%c0_12, %c17] : memref<4x256xf32, #tpu.memory_space<vmem>>, vector<4x239xf32>
      tpu.vector_store %arg6[%c0_12, %c17], %21 {strides = array<i32>} : memref<4x256xf32, #tpu.memory_space<vmem>>, vector<4x239xf32>,
      %c0_13 = arith.constant 0 : index
      %c0_14 = arith.constant 0 : index
      %c0_15 = arith.constant 0 : index
      %23 = vector.load %arg2[%c0_13, %c0_14, %c0_15] : memref<1x4x16xf32, #tpu.memory_space<vmem>>, vector<1x4x16xf32>
      %24 = vector.shape_cast %23 : vector<1x4x16xf32> to vector<4x16xf32>
      %c0_16 = arith.constant 0 : index
      %c1 = arith.constant 1 : index
      %25 = vector.load %arg6[%c0_16, %c1] : memref<4x256xf32, #tpu.memory_space<vmem>>, vector<4x16xf32>
      tpu.vector_store %arg6[%c0_16, %c1], %24 {strides = array<i32>} : memref<4x256xf32, #tpu.memory_space<vmem>>, vector<4x16xf32>,
    } else {
    }
    %c128_i32 = arith.constant 128 : i32
    %3 = arith.muli %arg1, %c128_i32 : i32
    %4 = tpu.assume_multiple %3, 128 : i32
    %c0 = arith.constant 0 : index
    %5 = arith.index_cast %4 : i32 to index
    %6 = vector.load %arg6[%c0, %5] : memref<4x256xf32, #tpu.memory_space<vmem>>, vector<4x256xf32>
    %7 = vector.extract_strided_slice %6 {offsets = [0, 0], sizes = [4, 128], strides = [1, 1]} : vector<4x256xf32> to vector<4x128xf32>
    %8 = vector.extract_strided_slice %6 {offsets = [0, 1], sizes = [4, 128], strides = [1, 1]} : vector<4x256xf32> to vector<4x128xf32>
    %9 = vector.extract_strided_slice %6 {offsets = [0, 2], sizes = [4, 128], strides = [1, 1]} : vector<4x256xf32> to vector<4x128xf32>
    %10 = tpu.concatenate %7, %8, %9 in 0 : vector<4x128xf32>, vector<4x128xf32>, vector<4x128xf32> -> vector<12x128xf32>
    %c0_1 = arith.constant 0 : index
    %c0_2 = arith.constant 0 : index
    %11 = vector.load %arg3[%c0_1, %c0_2] : memref<8x12xf32, #tpu.memory_space<vmem>>, vector<8x12xf32>
    %cst = arith.constant dense<0.000000e+00> : vector<8x128xf32>
    %12 = tpu.matmul %11, %10, %cst {dimension_numbers = #tpu.dot_dimension_numbers<[1], [0], [0], [1], [0, 0, 1, 1], [], []>} : vector<8x12xf32>, vector<12x128xf32>, vector<8x128xf32> -> vector<8x128xf32>
    %c0_3 = arith.constant 0 : index
    %c0_4 = arith.constant 0 : index
    %13 = vector.load %arg4[%c0_3, %c0_4] : memref<8x1xf32, #tpu.memory_space<vmem>>, vector<8x1xf32>
    %14 = vector.broadcast %13 : vector<8x1xf32> to vector<8x128xf32>
    %15 = arith.addf %12, %14 : vector<8x128xf32>
    %c0_5 = arith.constant 0 : index
    %c0_6 = arith.constant 0 : index
    %c0_7 = arith.constant 0 : index
    %16 = vector.load %arg5[%c0_5, %c0_6, %c0_7] : memref<1x8x128xf32, #tpu.memory_space<vmem>>, vector<1x8x128xf32>
    %17 = vector.shape_cast %16 : vector<1x8x128xf32> to vector<8x128xf32>
    %18 = vector.shape_cast %15 : vector<8x128xf32> to vector<1x8x128xf32>
    tpu.vector_store %arg5[%c0_5, %c0_6, %c0_7], %18 {strides = array<i32>} : memref<1x8x128xf32, #tpu.memory_space<vmem>>, vector<1x8x128xf32>,
    return
  }
  func.func @transform_0(%arg0: i32, %arg1: i32) -> (i32, i32, i32) {
    %c0_i32 = arith.constant 0 : i32
    %c0_i32_0 = arith.constant 0 : i32
    %c0_i32_1 = arith.constant 0 : i32
    return %arg0, %c0_i32, %c0_i32_0 : i32, i32, i32
  }
  func.func @transform_1(%arg0: i32, %arg1: i32) -> (i32, i32) {
    %c0_i32 = arith.constant 0 : i32
    %c0_i32_0 = arith.constant 0 : i32
    %c0_i32_1 = arith.constant 0 : i32
    return %c0_i32, %c0_i32_0 : i32, i32
  }
  func.func @transform_2(%arg0: i32, %arg1: i32) -> (i32, i32) {
    %c0_i32 = arith.constant 0 : i32
    %c0_i32_0 = arith.constant 0 : i32
    %c0_i32_1 = arith.constant 0 : i32
    return %c0_i32, %c0_i32_0 : i32, i32
  }
  func.func @transform_3(%arg0: i32, %arg1: i32) -> (i32, i32, i32) {
    %c0_i32 = arith.constant 0 : i32
    %c0_i32_0 = arith.constant 0 : i32
    return %arg0, %c0_i32, %arg1 : i32, i32, i32
  }
}

</mosaic_0001>

<bundles_post_ra>
// kernel: tpu_custom_call.1
= control target key start
LH: loop header
LB: loop body
LE: loop exit
PB: predicated region body
PF: predicated region fallthrough
CT: control target
= control target key end

     0   :  { %8 = vsyncpa [#allocation4], 0  ;;  %s827_s0 = inlined_call_operand.vmem [shape: f32[2,4,16], index: 0, kind: input, shape index: {}]   ;;  %s828_s1 = inlined_call_operand.hbm [shape: f32[8,12], index: 1, kind: input, shape index: {}]   ;;  %s829_s2 = inlined_call_operand.vmem [shape: f32[8,1], index: 2, kind: input, shape index: {}]   ;;  %s830_s3 = inlined_call_operand.hbm [shape: f32[2,8,16], index: 3, kind: output, shape index: {}]  }
   0x1   :  { %9 = vsyncpa [#allocation5], 0 }
   0x2   :  { %11 = vsyncpa [#allocation5 + $0x1], 0  ;;  %s674_s12 = smov 0   ;;  %s676_s13 = smov 0  }
   0x3   :  { %s678_s14 = smov 0   ;;  %s680_s15 = smov 0  }
   0x4   :  { %s682_s16 = smov 0   ;;  %s684_s17 = smov 0  }
   0x5 LB: > { %s415_s18 = sadd.s32 4294967295, %s642_s17   ;;  %s416_s19 = sadd.s32 4294967294, %s642_s17   ;;  %s642_s17 = sphi %s684_s17, %s17_s17   ;;  %s638_s16 = sphi %s682_s16, %s848_s16   ;;  %s634_s15 = sphi %s680_s15, %s847_s15   ;;  %s630_s14 = sphi %s678_s14, %s846_s14   ;;  %s626_s13 = sphi %s676_s13, %s845_s13   ;;  %s622_s12 = sphi %s674_s12, %s844_s12  }
   0x6   : > { %s29_s20 = sadd.s32 1, %s638_s16  ;;  %s106_s21 = sadd.s32 1, %s630_s14 }
   0x7   : > { %p31_p0 = scmp.ge.s32.totalorder %s29_s20, 2  ;;  %p116_p1 = scmp.ne.s32.totalorder %s630_s14, %s626_s13 }
   0x8   : > { %p117_p2 = scmp.eq.s32.totalorder %s415_s18, 1  ;;  %p122_p3 = scmp.ne.s32.totalorder %s626_s13, %s622_s12 }
   0x9   : > { %s850_s20 = smov (%p31_p0, %s29_s20), 0  ;;  %p123_p5 = scmp.eq.s32.totalorder %s416_s19, 1 }
   0xa   : > { %p714_p4 = por %p117_p2, %p116_p1  ;;  %s101_s23 = ssub.s32 %s638_s16, %s850_s20 }
   0xb   : > { %p417_p6 = scmp.ge.s32.totalorder %s642_s17, 1  ;;  %p104_p7 = scmp.eq.s32.totalorder %s101_s23, 0 }
   0xc   : > { %s835_s22 = scalar_select %p714_p4, 1, 0 }
   0xd   : > { %p721_p8 = por %p123_p5, %p122_p3  ;;  %p130_p9 = scmp.lt.s32.totalorder %s642_s17, 3 }
   0xe   : > { %s727_s25 = scalar_select %p104_p7, %s630_s14, %s106_s21  }
   0xf   : > { %s836_s24 = scalar_select %p721_p8, 1, 0 }
  0x10   : > { %p729_p10 = pnand %p417_p6, %p130_p9  ;;  %p733_p11 = scmp.eq.s32.totalorder %s415_s18, 0 }
  0x11   : > { %s644_s28 = smov [#allocation3]   ;;  %s532_s6 = scalar_lea.hbm %s828_s1, 128 }
  0x12   : > { %s837_s26 = scalar_select %p729_p10, 1, 0 }
  0x13   : > { %s838_s27 = scalar_select %p733_p11, 1, 0 }
  0x14   : > { %p450_p12 = pneg %p729_p10  ;;  %s143_s29 = sshll.u32 %s644_s28, 4  ;;  %s144_s29 = int_to_ptr.vmem [resolvable:$true] %s143_s29 }
  0x15   : > { %p533_p0 = scmp.ne.s32.totalorder %s828_s1, %s532_s6  ;;  %p539_p5 = scmp.lt.u32.totalorder %s532_s6, %s828_s1 }
  0x16   : > { %p741_p13 = pnand %p733_p11, %p450_p12 }
  0x18   : > { %p534_p1 = pneg %p741_p13 }
  0x1a   : > { %p535_p2 = pnand %p534_p1, %p533_p0 }
  0x1c   : > { %p536_p3 = pneg %p535_p2 }
  0x1e   : > { %p541_p6 = pnand %p539_p5, %p536_p3 }
  0x20   : > { %544 = shalt.err (!%p541_p6)
}
  0x21   : > { %s545_s11 = scalar_lea.vmem %s144_s29, 128  ;;  %p553_p8 = scmp.lt.s32.totalorder %s144_s29, %s144_s29 }
  0x22   : > { %p546_p7 = scmp.ne.s32.totalorder %s144_s29, %s545_s11  ;;  %p554_p4 = scmp.lt.s32.totalorder %s545_s11, %s545_s11 }
  0x24   : > { %p548_p9 = pnand %p546_p7, %p534_p1  ;;  %p555_p11 = por %p554_p4, %p553_p8 }
  0x26   : > { %p549_p12 = pneg %p548_p9 }
  0x28   : > { %p556_p10 = pnand %p555_p11, %p549_p12 }
  0x2a   : > { %559 = shalt.err (!%p556_p10)
}
  0x2b   : > { %453 = dma.hbm_to_vmem [thread:$0]  (!%p741_p13), %s828_s1, 128, %s144_s29, [#allocation4]  }
  0x2c   : > { %p840_p0 = scmp.ne.s32.totalorder %s837_s26, 0 }
  0x2d   : > { %p841_p2 = scmp.ne.s32.totalorder (!%p840_p0), %s838_s27, 0 }
  0x2e   : > { %166 = sbr.rel (%p840_p0) target bundleno = 540 (0x21c), region = 32 }
  0x35   : > { %613 = dma.done.wait (%p841_p2), [#allocation4], 128  }
  0x36   : > { %615 = vsyncadd (%p841_p2), [#allocation4], 4294967168  ;;  %p189_p4 = scmp.lt.s32.totalorder %s634_s15, 1  ;;  %vm197_vm0 = vcmask 3072   ;;  %vm199_vm1 = vcmask 1043592   ;;  %vm200_vm2 = vcmask 1047556  }
  0x37   : > { %v645_v0 = vmov 0.0   ;;  %vm201_vm3 = vmor %vm200_vm2, %vm199_vm1  ;;  %s646_s30 = smov 1   ;;  %vm208_vm4 = vcmask 134152   ;;  %v647_v3 = vmov 0.0|0.0   ;;  %vm648_vm5 = vmmov 0   ;;  %s650_s27 = smov 126  }
  0x38   : > { %198 = vst.msk [vmem:[#allocation2] sm:$0xf] %vm197_vm0, %v645_v0  ;;  %s190_s21 = scalar_select %p189_p4, %s634_s15, 1  ;;  %440 = vmatprep.subr.bf16.mxu0 %v647_v3  ;;  %437 = vmatprep.mubr.msk.f32.mxu0 %vm648_vm5, %v645_v0  ;;  %v649_v7 = vmov 0   ;;  %v235_v10 = vld [vmem:[%s829_s2] sm:$0xff]  ;;  %vm222_vm6 = vcmask 1039360  }
  0x39   : > { %202 = vst.msk [vmem:[#allocation2] sm:$0xff] %vm201_vm3, %v645_v0  ;;  %528 = vset.pattern.permute.xlu1 %v649_v7  ;;  %529 = vset.pattern.permute.xlu0 %v649_v7  ;;  %s651_s4 = smov 127   ;;  %vm230_vm7 = vcmask 1031168   ;;  %vm232_vm8 = vcmask 1043456   ;;  %vm652_vm9 = vmmov 1   ;;  %v234_v21 = vld [vmem:[#allocation3] sm:$0xff] }
  0x3a   : > { %s423_s23 = sshll.u32 %s190_s21, 2  ;;  %vm442_vm10 = vmpackc.low %vm232_vm8, %vm652_vm9  ;;  %vm241_vm11 = vcmask 97280   ;;  %s186_s7 = sand.u32 1, %s626_s13  }
  0x3b   : > { %s192_s29 = scalar_lea.vmem %s827_s0, %s423_s23  ;;  %s422_s8 = sshll.u32 %s186_s7, 3 }
  0x3c   : > { %v203_v1 = vld [vmem:[%s192_s29] sm:$0xf]  ;;  %s427_s9 = sshll.u32 %s634_s15, 7  ;;  %s188_s10 = scalar_lea.vmem [#allocation6], %s422_s8 }
  0x3d   : > { %205 = vrot.lane.b32.xlu0 %v203_v1, %s646_s30  ;;  %s333_s11 = sshll.u32 %s188_s10, 4  ;;  %s780_s21 = scalar_lea.hbm %s830_s3, %s427_s9  ;;  %s782_s11 = int_to_ptr.vmem [resolvable:$true] %s333_s11 }
  0x3e   : > { %s319_s23 = scalar_lea.sflag [#allocation5], %s186_s7  ;;  %s560_s26 = scalar_lea.vmem %s782_s11, 128 }
  0x3f   : > { %p561_p8 = scmp.ne.s32.totalorder %s782_s11, %s560_s26  ;;  %p842_p10 = scmp.ne.s32.totalorder %s835_s22, 0 }
  0x40   : > { %s653_s15 = smov [#allocation6]  }
  0x41   : > { %p562_p11 = pnand %p561_p8, %p842_p10  ;;  %s564_s28 = sshll.u32 %s653_s15, 4  ;;  %s565_s28 = int_to_ptr.vmem [resolvable:$false] %s564_s28 }
  0x42   : > { %s566_s29 = scalar_lea.vmem %s565_s28, 256  ;;  %p567_p1 = scmp.lt.s32.totalorder %s782_s11, %s565_s28 }
  0x43   : > { %p563_p13 = pneg %p562_p11  ;;  %p568_p3 = scmp.lt.s32.totalorder %s566_s29, %s560_s26 }
  0x45   : > { %p569_p5 = por %p568_p3, %p567_p1 }
  0x47   : > { %p570_p6 = pnand %p569_p5, %p563_p13 }
  0xaf   : > { %v206_v2 = vpop.permute.xlu0 %205 }
  0xb0   : > { %209 = vst.msk [vmem:[#allocation2] sm:$0xf] %vm208_vm4, %v206_v2 }
  0xb7   : > { %v215_v4 = vld [vmem:[#allocation2] sm:$0xff] }
  0xb8   : > { %v225_v5 = vcombine.high %v215_v4, %v215_v4  ;;  %v217_v6 = vcombine.low %v215_v4, %v215_v4 }
  0xba   : > { %v523_v8 = vpack.i.bf16 %v225_v5, %v215_v4  ;;  %v518_v9 = vpack.i.bf16 %v215_v4, %v217_v6 }
  0xbc   : > { %524 = vrot.lane.b32.xlu1 %v523_v8, %s650_s27  ;;  %519 = vrot.lane.b32.xlu0 %v518_v9, %s651_s4 }
  0xc0   : > { %238 = vperm.xlu1 %528, %v235_v10  }
 0x12e   : > { %v525_v11 = vpop.permute.xlu1 %524  ;;  %v520_v12 = vpop.permute.xlu0 %519 }
 0x12f   : > { %v527_v13 = vunpack.i.h.bf16 %v525_v11  ;;  %v526_v14 = vunpack.i.l.bf16 %v525_v11  ;;  %v522_v15 = vunpack.i.h.bf16 %v520_v12  ;;  %v521_v16 = vunpack.i.l.bf16 %v520_v12 }
 0x131   : > { %v223_v17 = vsel %vm222_vm6, %v521_v16, %v522_v15  ;;  %v231_v18 = vsel %vm230_vm7, %v526_v14, %v527_v13 }
 0x132   : > { %v233_v19 = vsel %vm232_vm8, %v215_v4, %v223_v17 }
 0x133   : > { %v441_v20 = vpack.c.bf16 %v231_v18, %v233_v19 }
 0x135   : > { %443 = vmatpush3.bf16.msk.msra.mxu0 %vm442_vm10, %v441_v20 }
 0x138   : > { %438 = vmatmul.mubr.msk.f32.vlgmr.msra.gmra.mrb[0].mxu0 %vm241_vm11, %v234_v21 }
 0x13f   : > { %v239_v22 = vpop.permute.xlu1 %238 }
 0x20b   : > { %v313_v23 = vpop.f32.mrb[0].mxu0 }
 0x20c   : > { %v314_v24 = vadd.f32 %v313_v23, %v239_v22  ;;  %v439_v25 = vpop.f32.mrb[1].mxu0 }
 0x20e   : > { %317 = vst [vmem:[%s188_s10] sm:$0xff] %v314_v24 }
 0x20f   : > { %573 = shalt.err (!%p570_p6)
}
 0x210   : > { %s574_s30 = scalar_lea.hbm %s780_s21, 128  ;;  %s578_s5 = scalar_lea.hbm %s830_s3, 256 }
 0x211   : > { %p575_p7 = scmp.ne.s32.totalorder %s780_s21, %s574_s30  ;;  %p579_p0 = scmp.lt.u32.totalorder %s780_s21, %s830_s3 }
 0x212   : > { %p580_p2 = scmp.lt.u32.totalorder %s578_s5, %s574_s30  ;;  %p582_p8 = scmp.lt.u32.totalorder %s574_s30, %s780_s21 }
 0x213   : > { %p576_p9 = pnand %p575_p7, %p842_p10 }
 0x214   : > { %p581_p4 = por %p580_p2, %p579_p0 }
 0x215   : > { %p577_p12 = pneg %p576_p9 }
 0x216   : > { %p583_p11 = por %p582_p8, %p581_p4 }
 0x218   : > { %p584_p13 = pnand %p583_p11, %p577_p12 }
 0x21a   : > { %587 = shalt.err (!%p584_p13)
}
 0x21b   : > { %448 = dma.vmem_to_hbm [thread:$0]  (%p842_p10), %s782_s11, 128, %s780_s21, %s319_s23  }
 0x21c PF: > { %p460_p1 = scmp.ge.s32.totalorder %s642_s17, 2  ;;  %s345_s8 = sand.u32 1, %s622_s12  }
 0x21d   : > { %p843_p3 = scmp.ne.s32.totalorder %s836_s24, 0  ;;  %s346_s9 = scalar_lea.sflag [#allocation5], %s345_s8 }
 0x21f   : > { %p455_p5 = pnand %p460_p1, %p843_p3 }
 0x221   : > { %617 = dma.done.wait (!%p455_p5), %s346_s9, 128  }
 0x222   : > { %619 = vsyncadd (!%p455_p5), %s346_s9, 4294967168  ;;  %s17_s17 = sadd.s32 1, %s642_s17   ;;  %s844_s12 = smov %s626_s13 }
 0x223   : > { %p14_p6 = scmp.ge.s32.totalorder %s17_s17, 4   ;;  %s845_s13 = smov %s630_s14 }
 0x224   : > { %s846_s14 = smov %s727_s25  ;;  %s847_s15 = smov %s638_s16 }
 0x225   : > { %s848_s16 = smov %s850_s20  ;;  %16 = sbr.rel (!%p14_p6) target bundleno = 5 (0x5), region = 77 }
 0x22c   :  { %351 = vsyncpa [#allocation4], 1 }
 0x22d   :  { %353 = vsyncpa [#allocation4 + $0x1], 1 }
 0x22e   :  { %354 = vsyncpa [#allocation5], 1 }
 0x22f   :  { %356 = vsyncpa [#allocation5 + $0x1], 1 }

</bundles_post_ra>
